<compile_context>
chip_gen: v6e
topology: v6e:2x2x1
jax: 0.10.0
libtpu: 0.0.40
codegen_flags: <defaults>
</compile_context>

<pallas_src>
import functools

import jax
import jax.numpy as jnp
from jax.experimental import pallas as pl
from jax.experimental.pallas import tpu as pltpu


def _basic_block_kernel(x_ref, w1_ref, b1_ref, w2_ref, b2_ref, o_ref,
                        buf1_ref, buf2_ref, *, img_w, guard, batch_tile):
    """Fused conv3x3 -> conv3x3 -> +residual for one batch tile of TB images.

    x_ref:    (TB, Cin, H*W)        flattened activations (spatial on lanes)
    w1_ref:   (Cmid, 9*CP)          im2col conv1 weight, tap-major, channel-minor,
                                    channel dim zero-padded to CP = 8
    b1_ref:   (Cmid, 1)
    w2_ref:   (Cmid, 9*CP)
    b2_ref:   (Cmid, 1)
    o_ref:    (TB, Cmid, H*W)
    buf1_ref: (CP, G + TB*(HW+G))   VMEM: zero-guarded, channel-padded input copy
    buf2_ref: (CP, G + TB*(HW+G))   VMEM: zero-guarded, channel-padded conv1 output
    """
    tb = batch_tile
    cin = x_ref.shape[1]
    cmid = o_ref.shape[1]
    hw = x_ref.shape[2]
    g = guard
    w = img_w
    stride = hw + g                 # lane stride between images inside the scratch
    l = tb * stride - g             # matmul N dim: all images + interior guard lanes

    # Zero both scratch buffers every step (guards + padded channel rows).
    # Scratch is per-core and the grid axis is "parallel" (megacore-sharded),
    # so a program_id==0 init would not run on every core.  A full-buffer zero
    # is a handful of full-width vreg stores - cheaper/simpler than zeroing
    # each guard zone and pad row individually.
    buf1_ref[...] = jnp.zeros_like(buf1_ref)
    buf2_ref[...] = jnp.zeros_like(buf2_ref)

    # Copy the TB input images into the guarded buffer.  Every lane offset is a
    # multiple of 128 (hw and g both are), so stores are lane-aligned.
    for b in range(tb):
        buf1_ref[0:cin, g + b * stride: g + b * stride + hw] = (
            x_ref[b].astype(jnp.float32))

    # Column masks generated in-kernel (no HBM mask stream).  For a data lane p
    # (relative to the start of the data span) the within-image column is
    # (p % stride) % w; guard lanes are don't-care (their outputs are dropped).
    ids = jax.lax.broadcasted_iota(jnp.int32, (1, l), 1)
    if (w & (w - 1)) == 0 and stride % w == 0:
        col = jnp.bitwise_and(ids, w - 1)         # fast path: W power of two
    else:
        col = (ids % stride) % w
    lmask = (col != 0).astype(jnp.float32)        # kills wrapped reads of kx == 0 taps
    rmask = (col != w - 1).astype(jnp.float32)    # kills wrapped reads of kx == 2 taps

    def im2col(buf):
        # Nine shifted (CP, L) slices concatenated along sublanes.  CP == 8, so
        # every piece is exactly one f32 sublane tile -> tile-aligned concat,
        # no sublane repacking before the MXU push.
        taps = []
        for ky in range(3):
            for kx in range(3):
                start = g + (ky - 1) * w + (kx - 1)
                t = buf[:, start:start + l]       # pure lane slice, no reshape
                if kx == 0:
                    t = t * lmask
                elif kx == 2:
                    t = t * rmask
                taps.append(t)
        return jnp.concatenate(taps, axis=0)      # (9*CP, L)

    # conv1: one MXU call for the whole batch tile, K = 9*CP = 72, N = L lanes.
    o1 = jnp.dot(w1_ref[...], im2col(buf1_ref),
                 preferred_element_type=jnp.float32) + b1_ref[...]
    # Store per image so the interior guard lanes of buf2 stay zero.
    for b in range(tb):
        buf2_ref[0:cmid, g + b * stride: g + b * stride + hw] = (
            o1[:, b * stride: b * stride + hw])

    # conv2 (+ residual re-read from the resident input block - x is not kept
    # live across both matmuls).
    o2 = jnp.dot(w2_ref[...], im2col(buf2_ref),
                 preferred_element_type=jnp.float32) + b2_ref[...]
    for b in range(tb):
        res = x_ref[b].astype(jnp.float32)
        o_ref[b] = (o2[:, b * stride: b * stride + hw] + res).astype(o_ref.dtype)

    # TODO(synk): Dropout(p=0.02) is implemented as identity (eval-mode);
    # training-mode needs pltpu.prng_seed/prng_random_bits masking + 1/(1-p) scale.


def basic_block_forward(x_nchw, w1, b1, w2, b2, *, batch_tile=None):
    """x_nchw: (N, Cin, H, W); conv weights in PyTorch OIHW layout."""
    N, Cin, H, W = x_nchw.shape
    Cmid = w1.shape[0]
    assert Cin == Cmid, "residual add requires inplanes == planes (downsample=None)"
    HW = H * W
    assert HW % 128 == 0, "flattened spatial size must be lane-tile aligned"

    # Guard lanes on each side of every image: >= W+1 zeros, rounded to a lane tile.
    G = ((W + 1 + 127) // 128) * 128
    CP = 8                                         # channels padded to one f32 sublane tile
    assert Cin <= CP and Cmid <= CP

    # Batch tile: keep >= 2 grid steps when possible (so both v7x TensorCores
    # get work under dimension_semantics=("parallel",)); otherwise as fat as
    # possible to amortize per-step pipeline overhead.
    if batch_tile is None:
        batch_tile = max(1, N // 2)
        while N % batch_tile:
            batch_tile -= 1
    TB = batch_tile
    assert N % TB == 0

    STRIDE = HW + G
    WTOT = G + TB * STRIDE

    # Free activation reshape + one-time tiny weight reshuffle: rows stay in
    # PyTorch OIHW order, columns become (tap-major, channel-minor) with the
    # channel dim zero-padded to CP so every im2col tap group is a full tile.
    x_flat = x_nchw.reshape(N, Cin, HW)

    def pack_weight(wt, cin_w):
        wk = jnp.transpose(wt, (0, 2, 3, 1)).reshape(Cmid, 9, cin_w)
        wk = jnp.pad(wk, ((0, 0), (0, 0), (0, CP - cin_w)))
        return wk.reshape(Cmid, 9 * CP)

    w1_mat = pack_weight(w1, Cin)
    w2_mat = pack_weight(w2, Cmid)
    b1_col = b1.reshape(Cmid, 1)
    b2_col = b2.reshape(Cmid, 1)

    kernel = functools.partial(_basic_block_kernel, img_w=W, guard=G,
                               batch_tile=TB)

    # TODO(synk): at ResNet-scale H/W/C add a row-tile grid axis (1-row halo),
    # size per-step VMEM against v7x first (64 MiB physical / 32 MiB scoped
    # default; set vmem_limit_bytes explicitly), and consider bf16 scratch +
    # im2col with f32 MXU accumulation.  At 4x16x16 one fat step per batch tile
    # fits VMEM trivially.
    out_flat = pl.pallas_call(
        kernel,
        out_shape=jax.ShapeDtypeStruct((N, Cmid, HW), x_nchw.dtype),
        grid_spec=pltpu.PrefetchScalarGridSpec(
            num_scalar_prefetch=0,
            grid=(N // TB,),
            in_specs=[
                pl.BlockSpec((TB, Cin, HW), lambda n: (n, 0, 0)),
                pl.BlockSpec((Cmid, 9 * CP), lambda n: (0, 0)),
                pl.BlockSpec((Cmid, 1), lambda n: (0, 0)),
                pl.BlockSpec((Cmid, 9 * CP), lambda n: (0, 0)),
                pl.BlockSpec((Cmid, 1), lambda n: (0, 0)),
            ],
            out_specs=pl.BlockSpec((TB, Cmid, HW), lambda n: (n, 0, 0)),
            scratch_shapes=[
                pltpu.VMEM((CP, WTOT), jnp.float32),
                pltpu.VMEM((CP, WTOT), jnp.float32),
            ],
        ),
        compiler_params=pltpu.CompilerParams(
            dimension_semantics=("parallel",)),
    )(x_flat, w1_mat, b1_col, w2_mat, b2_col)

    return out_flat.reshape(N, Cmid, H, W)


def _reference(x_nchw, w1, b1, w2, b2):
    """Pure-JAX reference mirroring the PyTorch module (eval mode)."""
    dn = ("NCHW", "OIHW", "NCHW")
    out = jax.lax.conv_general_dilated(x_nchw, w1, (1, 1), "SAME",
                                       dimension_numbers=dn,
                                       precision=jax.lax.Precision.HIGHEST)
    out = out + b1.reshape(1, -1, 1, 1)
    out = jax.lax.conv_general_dilated(out, w2, (1, 1), "SAME",
                                       dimension_numbers=dn,
                                       precision=jax.lax.Precision.HIGHEST)
    out = out + b2.reshape(1, -1, 1, 1)
    return out + x_nchw


if __name__ == "__main__":
    # BasicBlock(inplanes=4, planes=4, stride=1, downsample=None)
    N, C, H, W = 2, 4, 16, 16
    key = jax.random.PRNGKey(0)
    kx, k1, kb1, k2, kb2 = jax.random.split(key, 5)

    x = jax.random.normal(kx, (N, C, H, W), jnp.float32)
    # deterministic synthetic parameters (PyTorch OIHW conv layout)
    w1 = jax.random.normal(k1, (C, C, 3, 3), jnp.float32) * 0.1
    b1 = jax.random.normal(kb1, (C,), jnp.float32) * 0.1
    w2 = jax.random.normal(k2, (C, C, 3, 3), jnp.float32) * 0.1
    b2 = jax.random.normal(kb2, (C,), jnp.float32) * 0.1

    out = jax.block_until_ready(basic_block_forward(x, w1, b1, w2, b2))
    ref = jax.block_until_ready(_reference(x, w1, b1, w2, b2))
    assert out.shape == (N, C, H, W)
    assert jnp.max(jnp.abs(out - ref)) < 1e-4, "mismatch vs reference (N=2)"

    # Exercise the batched path (TB > 1 images per grid step).
    N2 = 8
    x2 = jax.random.normal(jax.random.PRNGKey(1), (N2, C, H, W), jnp.float32)
    out2 = jax.block_until_ready(basic_block_forward(x2, w1, b1, w2, b2))
    ref2 = jax.block_until_ready(_reference(x2, w1, b1, w2, b2))
    assert jnp.max(jnp.abs(out2 - ref2)) < 1e-4, "mismatch vs reference (N=8, TB=4)"

    print("KERNEL_OK")
</pallas_src>

<mosaic_0001>
module attributes {stable_mosaic.version = 11 : i64} {
  func.func @_basic_block_kernel(%arg0: i32, %arg1: memref<1x4x256xf32, #tpu.memory_space<vmem>>, %arg2: memref<4x72xf32, #tpu.memory_space<vmem>>, %arg3: memref<4x1xf32, #tpu.memory_space<vmem>>, %arg4: memref<4x72xf32, #tpu.memory_space<vmem>>, %arg5: memref<4x1xf32, #tpu.memory_space<vmem>>, %arg6: memref<1x4x256xf32, #tpu.memory_space<vmem>>, %arg7: memref<8x512xf32, #tpu.memory_space<vmem>>, %arg8: memref<8x512xf32, #tpu.memory_space<vmem>>) attributes {dimension_semantics = [#tpu.dimension_semantics<parallel>], iteration_bounds = array<i64: 2>, scalar_prefetch = 0 : i64, scratch_operands = 2 : i64, tpu.core_type = #tpu.core_type<tc>, window_params = [{transform_indices = @transform_0, window_bounds = array<i64: 1, 4, 256>}, {pipeline_mode = #tpu.pipeline_mode<synchronous>, transform_indices = @transform_1, window_bounds = array<i64: 4, 72>}, {pipeline_mode = #tpu.pipeline_mode<synchronous>, transform_indices = @transform_2, window_bounds = array<i64: 4, 1>}, {pipeline_mode = #tpu.pipeline_mode<synchronous>, transform_indices = @transform_3, window_bounds = array<i64: 4, 72>}, {pipeline_mode = #tpu.pipeline_mode<synchronous>, transform_indices = @transform_4, window_bounds = array<i64: 4, 1>}, {transform_indices = @transform_5, window_bounds = array<i64: 1, 4, 256>}]} {
    %cst = arith.constant 0.000000e+00 : f32
    %0 = vector.broadcast %cst : f32 to vector<8x512xf32>
    %c0 = arith.constant 0 : index
    %c0_0 = arith.constant 0 : index
    %1 = vector.load %arg7[%c0, %c0_0] : memref<8x512xf32, #tpu.memory_space<vmem>>, vector<8x512xf32>
    tpu.vector_store %arg7[%c0, %c0_0], %0 {strides = array<i32>} : memref<8x512xf32, #tpu.memory_space<vmem>>, vector<8x512xf32>,
    %cst_1 = arith.constant 0.000000e+00 : f32
    %2 = vector.broadcast %cst_1 : f32 to vector<8x512xf32>
    %c0_2 = arith.constant 0 : index
    %c0_3 = arith.constant 0 : index
    %3 = vector.load %arg8[%c0_2, %c0_3] : memref<8x512xf32, #tpu.memory_space<vmem>>, vector<8x512xf32>
    tpu.vector_store %arg8[%c0_2, %c0_3], %2 {strides = array<i32>} : memref<8x512xf32, #tpu.memory_space<vmem>>, vector<8x512xf32>,
    %c0_4 = arith.constant 0 : index
    %c0_5 = arith.constant 0 : index
    %c0_6 = arith.constant 0 : index
    %4 = vector.load %arg1[%c0_4, %c0_5, %c0_6] : memref<1x4x256xf32, #tpu.memory_space<vmem>>, vector<1x4x256xf32>
    %5 = vector.shape_cast %4 : vector<1x4x256xf32> to vector<4x256xf32>
    %c0_7 = arith.constant 0 : index
    %c128 = arith.constant 128 : index
    %6 = vector.load %arg7[%c0_7, %c128] : memref<8x512xf32, #tpu.memory_space<vmem>>, vector<4x256xf32>
    tpu.vector_store %arg7[%c0_7, %c128], %5 {strides = array<i32>} : memref<8x512xf32, #tpu.memory_space<vmem>>, vector<4x256xf32>,
    %7 = tpu.iota {dimensions = array<i32: 1>} : vector<1x256xi32>
    %c15_i32 = arith.constant 15 : i32
    %8 = vector.broadcast %c15_i32 : i32 to vector<1x256xi32>
    %9 = arith.andi %7, %8 : vector<1x256xi32>
    %c0_i32 = arith.constant 0 : i32
    %10 = vector.broadcast %c0_i32 : i32 to vector<1x256xi32>
    %11 = arith.cmpi ne, %9, %10 : vector<1x256xi32>
    %12 = arith.extui %11 : vector<1x256xi1> to vector<1x256xi32>
    %13 = arith.sitofp %12 : vector<1x256xi32> to vector<1x256xf32>
    %c15_i32_8 = arith.constant 15 : i32
    %14 = vector.broadcast %c15_i32_8 : i32 to vector<1x256xi32>
    %15 = arith.cmpi ne, %9, %14 : vector<1x256xi32>
    %16 = arith.extui %15 : vector<1x256xi1> to vector<1x256xi32>
    %17 = arith.sitofp %16 : vector<1x256xi32> to vector<1x256xf32>
    %c0_9 = arith.constant 0 : index
    %c0_10 = arith.constant 0 : index
    %18 = vector.load %arg2[%c0_9, %c0_10] : memref<4x72xf32, #tpu.memory_space<vmem>>, vector<4x72xf32>
    %c0_11 = arith.constant 0 : index
    %c111 = arith.constant 111 : index
    %19 = vector.load %arg7[%c0_11, %c111] : memref<8x512xf32, #tpu.memory_space<vmem>>, vector<8x256xf32>
    %20 = vector.broadcast %13 : vector<1x256xf32> to vector<8x256xf32>
    %21 = arith.mulf %19, %20 : vector<8x256xf32>
    %c0_12 = arith.constant 0 : index
    %c112 = arith.constant 112 : index
    %22 = vector.load %arg7[%c0_12, %c112] : memref<8x512xf32, #tpu.memory_space<vmem>>, vector<8x256xf32>
    %c0_13 = arith.constant 0 : index
    %c113 = arith.constant 113 : index
    %23 = vector.load %arg7[%c0_13, %c113] : memref<8x512xf32, #tpu.memory_space<vmem>>, vector<8x256xf32>
    %24 = vector.broadcast %17 : vector<1x256xf32> to vector<8x256xf32>
    %25 = arith.mulf %23, %24 : vector<8x256xf32>
    %c0_14 = arith.constant 0 : index
    %c127 = arith.constant 127 : index
    %26 = vector.load %arg7[%c0_14, %c127] : memref<8x512xf32, #tpu.memory_space<vmem>>, vector<8x256xf32>
    %27 = vector.broadcast %13 : vector<1x256xf32> to vector<8x256xf32>
    %28 = arith.mulf %26, %27 : vector<8x256xf32>
    %c0_15 = arith.constant 0 : index
    %c128_16 = arith.constant 128 : index
    %29 = vector.load %arg7[%c0_15, %c128_16] : memref<8x512xf32, #tpu.memory_space<vmem>>, vector<8x256xf32>
    %c0_17 = arith.constant 0 : index
    %c129 = arith.constant 129 : index
    %30 = vector.load %arg7[%c0_17, %c129] : memref<8x512xf32, #tpu.memory_space<vmem>>, vector<8x256xf32>
    %31 = vector.broadcast %17 : vector<1x256xf32> to vector<8x256xf32>
    %32 = arith.mulf %30, %31 : vector<8x256xf32>
    %c0_18 = arith.constant 0 : index
    %c143 = arith.constant 143 : index
    %33 = vector.load %arg7[%c0_18, %c143] : memref<8x512xf32, #tpu.memory_space<vmem>>, vector<8x256xf32>
    %34 = vector.broadcast %13 : vector<1x256xf32> to vector<8x256xf32>
    %35 = arith.mulf %33, %34 : vector<8x256xf32>
    %c0_19 = arith.constant 0 : index
    %c144 = arith.constant 144 : index
    %36 = vector.load %arg7[%c0_19, %c144] : memref<8x512xf32, #tpu.memory_space<vmem>>, vector<8x256xf32>
    %c0_20 = arith.constant 0 : index
    %c145 = arith.constant 145 : index
    %37 = vector.load %arg7[%c0_20, %c145] : memref<8x512xf32, #tpu.memory_space<vmem>>, vector<8x256xf32>
    %38 = vector.broadcast %17 : vector<1x256xf32> to vector<8x256xf32>
    %39 = arith.mulf %37, %38 : vector<8x256xf32>
    %40 = tpu.concatenate %21, %22, %25, %28, %29, %32, %35, %36, %39 in 0 : vector<8x256xf32>, vector<8x256xf32>, vector<8x256xf32>, vector<8x256xf32>, vector<8x256xf32>, vector<8x256xf32>, vector<8x256xf32>, vector<8x256xf32>, vector<8x256xf32> -> vector<72x256xf32>
    %cst_21 = arith.constant dense<0.000000e+00> : vector<4x256xf32>
    %41 = tpu.matmul %18, %40, %cst_21 {dimension_numbers = #tpu.dot_dimension_numbers<[1], [0], [0], [1], [0, 0, 1, 1], [], []>} : vector<4x72xf32>, vector<72x256xf32>, vector<4x256xf32> -> vector<4x256xf32>
    %c0_22 = arith.constant 0 : index
    %c0_23 = arith.constant 0 : index
    %42 = vector.load %arg3[%c0_22, %c0_23] : memref<4x1xf32, #tpu.memory_space<vmem>>, vector<4x1xf32>
    %43 = vector.broadcast %42 : vector<4x1xf32> to vector<4x256xf32>
    %44 = arith.addf %41, %43 : vector<4x256xf32>
    %c0_24 = arith.constant 0 : index
    %c128_25 = arith.constant 128 : index
    %45 = vector.load %arg8[%c0_24, %c128_25] : memref<8x512xf32, #tpu.memory_space<vmem>>, vector<4x256xf32>
    tpu.vector_store %arg8[%c0_24, %c128_25], %44 {strides = array<i32>} : memref<8x512xf32, #tpu.memory_space<vmem>>, vector<4x256xf32>,
    %c0_26 = arith.constant 0 : index
    %c0_27 = arith.constant 0 : index
    %46 = vector.load %arg4[%c0_26, %c0_27] : memref<4x72xf32, #tpu.memory_space<vmem>>, vector<4x72xf32>
    %c0_28 = arith.constant 0 : index
    %c111_29 = arith.constant 111 : index
    %47 = vector.load %arg8[%c0_28, %c111_29] : memref<8x512xf32, #tpu.memory_space<vmem>>, vector<8x256xf32>
    %48 = vector.broadcast %13 : vector<1x256xf32> to vector<8x256xf32>
    %49 = arith.mulf %47, %48 : vector<8x256xf32>
    %c0_30 = arith.constant 0 : index
    %c112_31 = arith.constant 112 : index
    %50 = vector.load %arg8[%c0_30, %c112_31] : memref<8x512xf32, #tpu.memory_space<vmem>>, vector<8x256xf32>
    %c0_32 = arith.constant 0 : index
    %c113_33 = arith.constant 113 : index
    %51 = vector.load %arg8[%c0_32, %c113_33] : memref<8x512xf32, #tpu.memory_space<vmem>>, vector<8x256xf32>
    %52 = vector.broadcast %17 : vector<1x256xf32> to vector<8x256xf32>
    %53 = arith.mulf %51, %52 : vector<8x256xf32>
    %c0_34 = arith.constant 0 : index
    %c127_35 = arith.constant 127 : index
    %54 = vector.load %arg8[%c0_34, %c127_35] : memref<8x512xf32, #tpu.memory_space<vmem>>, vector<8x256xf32>
    %55 = vector.broadcast %13 : vector<1x256xf32> to vector<8x256xf32>
    %56 = arith.mulf %54, %55 : vector<8x256xf32>
    %c0_36 = arith.constant 0 : index
    %c128_37 = arith.constant 128 : index
    %57 = vector.load %arg8[%c0_36, %c128_37] : memref<8x512xf32, #tpu.memory_space<vmem>>, vector<8x256xf32>
    %c0_38 = arith.constant 0 : index
    %c129_39 = arith.constant 129 : index
    %58 = vector.load %arg8[%c0_38, %c129_39] : memref<8x512xf32, #tpu.memory_space<vmem>>, vector<8x256xf32>
    %59 = vector.broadcast %17 : vector<1x256xf32> to vector<8x256xf32>
    %60 = arith.mulf %58, %59 : vector<8x256xf32>
    %c0_40 = arith.constant 0 : index
    %c143_41 = arith.constant 143 : index
    %61 = vector.load %arg8[%c0_40, %c143_41] : memref<8x512xf32, #tpu.memory_space<vmem>>, vector<8x256xf32>
    %62 = vector.broadcast %13 : vector<1x256xf32> to vector<8x256xf32>
    %63 = arith.mulf %61, %62 : vector<8x256xf32>
    %c0_42 = arith.constant 0 : index
    %c144_43 = arith.constant 144 : index
    %64 = vector.load %arg8[%c0_42, %c144_43] : memref<8x512xf32, #tpu.memory_space<vmem>>, vector<8x256xf32>
    %c0_44 = arith.constant 0 : index
    %c145_45 = arith.constant 145 : index
    %65 = vector.load %arg8[%c0_44, %c145_45] : memref<8x512xf32, #tpu.memory_space<vmem>>, vector<8x256xf32>
    %66 = vector.broadcast %17 : vector<1x256xf32> to vector<8x256xf32>
    %67 = arith.mulf %65, %66 : vector<8x256xf32>
    %68 = tpu.concatenate %49, %50, %53, %56, %57, %60, %63, %64, %67 in 0 : vector<8x256xf32>, vector<8x256xf32>, vector<8x256xf32>, vector<8x256xf32>, vector<8x256xf32>, vector<8x256xf32>, vector<8x256xf32>, vector<8x256xf32>, vector<8x256xf32> -> vector<72x256xf32>
    %cst_46 = arith.constant dense<0.000000e+00> : vector<4x256xf32>
    %69 = tpu.matmul %46, %68, %cst_46 {dimension_numbers = #tpu.dot_dimension_numbers<[1], [0], [0], [1], [0, 0, 1, 1], [], []>} : vector<4x72xf32>, vector<72x256xf32>, vector<4x256xf32> -> vector<4x256xf32>
    %c0_47 = arith.constant 0 : index
    %c0_48 = arith.constant 0 : index
    %70 = vector.load %arg5[%c0_47, %c0_48] : memref<4x1xf32, #tpu.memory_space<vmem>>, vector<4x1xf32>
    %71 = vector.broadcast %70 : vector<4x1xf32> to vector<4x256xf32>
    %72 = arith.addf %69, %71 : vector<4x256xf32>
    %c0_49 = arith.constant 0 : index
    %c0_50 = arith.constant 0 : index
    %c0_51 = arith.constant 0 : index
    %73 = vector.load %arg1[%c0_49, %c0_50, %c0_51] : memref<1x4x256xf32, #tpu.memory_space<vmem>>, vector<1x4x256xf32>
    %74 = vector.shape_cast %73 : vector<1x4x256xf32> to vector<4x256xf32>
    %75 = arith.addf %72, %74 : vector<4x256xf32>
    %c0_52 = arith.constant 0 : index
    %c0_53 = arith.constant 0 : index
    %c0_54 = arith.constant 0 : index
    %76 = vector.load %arg6[%c0_52, %c0_53, %c0_54] : memref<1x4x256xf32, #tpu.memory_space<vmem>>, vector<1x4x256xf32>
    %77 = vector.shape_cast %76 : vector<1x4x256xf32> to vector<4x256xf32>
    %78 = vector.shape_cast %75 : vector<4x256xf32> to vector<1x4x256xf32>
    tpu.vector_store %arg6[%c0_52, %c0_53, %c0_54], %78 {strides = array<i32>} : memref<1x4x256xf32, #tpu.memory_space<vmem>>, vector<1x4x256xf32>,
    return
  }
  func.func @transform_0(%arg0: i32) -> (i32, i32, i32) {
    %c0_i32 = arith.constant 0 : i32
    %c0_i32_0 = arith.constant 0 : i32
    %c0_i32_1 = arith.constant 0 : i32
    return %arg0, %c0_i32, %c0_i32_0 : i32, i32, i32
  }
  func.func @transform_1(%arg0: i32) -> (i32, i32) {
    %c0_i32 = arith.constant 0 : i32
    %c0_i32_0 = arith.constant 0 : i32
    %c0_i32_1 = arith.constant 0 : i32
    return %c0_i32, %c0_i32_0 : i32, i32
  }
  func.func @transform_2(%arg0: i32) -> (i32, i32) {
    %c0_i32 = arith.constant 0 : i32
    %c0_i32_0 = arith.constant 0 : i32
    %c0_i32_1 = arith.constant 0 : i32
    return %c0_i32, %c0_i32_0 : i32, i32
  }
  func.func @transform_3(%arg0: i32) -> (i32, i32) {
    %c0_i32 = arith.constant 0 : i32
    %c0_i32_0 = arith.constant 0 : i32
    %c0_i32_1 = arith.constant 0 : i32
    return %c0_i32, %c0_i32_0 : i32, i32
  }
  func.func @transform_4(%arg0: i32) -> (i32, i32) {
    %c0_i32 = arith.constant 0 : i32
    %c0_i32_0 = arith.constant 0 : i32
    %c0_i32_1 = arith.constant 0 : i32
    return %c0_i32, %c0_i32_0 : i32, i32
  }
  func.func @transform_5(%arg0: i32) -> (i32, i32, i32) {
    %c0_i32 = arith.constant 0 : i32
    %c0_i32_0 = arith.constant 0 : i32
    %c0_i32_1 = arith.constant 0 : i32
    return %arg0, %c0_i32, %c0_i32_0 : i32, i32, i32
  }
}

</mosaic_0001>

<bundles_post_ra>
// kernel: tpu_custom_call.1
= control target key start
LH: loop header
LB: loop body
LE: loop exit
PB: predicated region body
PF: predicated region fallthrough
CT: control target
= control target key end

     0   :  { %10 = vsyncpa [#allocation5], 0  ;;  %s1730_s0 = inlined_call_operand.hbm [shape: f32[2,4,256], index: 0, kind: input, shape index: {}]   ;;  %s1731_s1 = inlined_call_operand.vmem [shape: f32[4,72], index: 1, kind: input, shape index: {}]   ;;  %s1732_s2 = inlined_call_operand.vmem [shape: f32[4,1], index: 2, kind: input, shape index: {}]   ;;  %s1733_s3 = inlined_call_operand.vmem [shape: f32[4,72], index: 3, kind: input, shape index: {}]   ;;  %s1734_s4 = inlined_call_operand.vmem [shape: f32[4,1], index: 4, kind: input, shape index: {}]   ;;  %s1735_s5 = inlined_call_operand.hbm [shape: f32[2,4,256], index: 5, kind: output, shape index: {}]  }
   0x1   :  { %12 = vsyncpa [#allocation5 + $0x1], 0 }
   0x2   :  { %13 = vsyncpa [#allocation6], 0 }
   0x3   :  { %15 = vsyncpa [#allocation6 + $0x1], 0  ;;  %s1249_s18 = smov 0   ;;  %s1251_s19 = smov 0  }
   0x4   :  { %s1253_s20 = smov 0   ;;  %s1255_s21 = smov 0  }
   0x5 LB: > { %s1270_s22 = sadd.s32 4294967295, %s1201_s21   ;;  %s995_s23 = sadd.s32 4294967294, %s1201_s21   ;;  %s1201_s21 = sphi %s1255_s21, %s1752_s21   ;;  %s1197_s20 = sphi %s1253_s20, %s1751_s20   ;;  %s1193_s19 = sphi %s1251_s19, %s1750_s19   ;;  %s1189_s18 = sphi %s1249_s18, %s1749_s18  }
   0x6   : > { %s1274_s24 = sadd.s32 1, %s1201_s21   ;;  %s28_s25 = sadd.s32 1, %s1197_s20 }
   0x7   : > { %s25_s26 = ssub.s32 %s1201_s21, %s1274_s24  ;;  %p35_p0 = scmp.ne.s32.totalorder %s1197_s20, %s1193_s19 }
   0x8   : > { %p26_p1 = scmp.eq.s32.totalorder %s25_s26, 0  ;;  %p36_p2 = scmp.eq.s32.totalorder %s1201_s21, 0 }
   0x9   : > { %p41_p3 = scmp.ne.s32.totalorder %s1193_s19, %s1189_s18  ;;  %p42_p4 = scmp.eq.s32.totalorder %s1270_s22, 0 }
   0xa   : > { %s1286_s27 = scalar_select %p26_p1, %s1197_s20, %s28_s25  }
   0xb   : > { %p1288_p5 = por %p36_p2, %p35_p0  ;;  %p1292_p6 = por %p42_p4, %p41_p3 }
   0xc   : > { %p149_p7 = scmp.eq.s32.totalorder %s1270_s22, 1  ;;  %p155_p8 = scmp.eq.s32.totalorder %s995_s23, 1 }
   0xd   : > { %s1739_s29 = scalar_select %p1292_p6, 1, 0 }
   0xe   : > { %p1029_p10 = scmp.lt.s32.totalorder %s1201_s21, 2  ;;  %p1299_p11 = por %p149_p7, %p35_p0 }
   0xf   : > { %p1303_p12 = por %p155_p8, %p41_p3  ;;  %s187_s7 = sand.u32 1, %s1197_s20  }
  0x10   : > { %s1740_s30 = scalar_select %p1299_p11, 1, 0 }
  0x11   : > { %s1741_s6 = scalar_select %p1303_p12, 1, 0 }
  0x12   : > { %s1015_s8 = sshll.u32 %s1201_s21, 7  ;;  %s998_s9 = sshll.u32 %s187_s7, 3 }
  0x13   : > { %s1312_s12 = scalar_lea.hbm %s1730_s0, %s1015_s8  ;;  %s191_s13 = scalar_lea.vmem [#allocation4], %s998_s9 }
  0x14   : > { %s199_s14 = sshll.u32 %s191_s13, 4  ;;  %p1316_p13 = pnand %p1029_p10, %p1288_p5  ;;  %s1320_s14 = int_to_ptr.vmem [resolvable:$true] %s199_s14 }
  0x15   : > { %s188_s16 = scalar_lea.sflag [#allocation5], %s187_s7  ;;  %s1109_s17 = scalar_lea.hbm %s1312_s12, 128 }
  0x16   : > { %p1110_p2 = scmp.ne.s32.totalorder %s1312_s12, %s1109_s17  ;;  %p1111_p3 = pneg %p1316_p13 }
  0x17   : > { %s1114_s26 = scalar_lea.hbm %s1730_s0, 256  ;;  %p1115_p5 = scmp.lt.s32.totalorder %s1312_s12, %s1730_s0 }
  0x18   : > { %p1112_p4 = pnand %p1111_p3, %p1110_p2  ;;  %p1116_p8 = scmp.lt.s32.totalorder %s1114_s26, %s1109_s17 }
  0x1a   : > { %p1113_p7 = pneg %p1112_p4  ;;  %p1117_p10 = por %p1116_p8, %p1115_p5 }
  0x1c   : > { %p1118_p9 = pnand %p1117_p10, %p1113_p7 }
  0x1e   : > { %1121 = shalt.err (!%p1118_p9)
}
  0x1f   : > { %s1122_s7 = scalar_lea.vmem %s1320_s14, 128  ;;  %s1203_s9 = smov [#allocation4]  }
  0x20   : > { %p1123_p0 = scmp.ne.s32.totalorder %s1320_s14, %s1122_s7  ;;  %s1127_s10 = sshll.u32 %s1203_s9, 4  ;;  %s1128_s10 = int_to_ptr.vmem [resolvable:$false] %s1127_s10 }
  0x21   : > { %s1129_s11 = scalar_lea.vmem %s1128_s10, 256  ;;  %p1130_p4 = scmp.lt.s32.totalorder %s1320_s14, %s1128_s10 }
  0x22   : > { %p1125_p1 = pnand %p1123_p0, %p1111_p3  ;;  %p1131_p12 = scmp.lt.s32.totalorder %s1129_s11, %s1122_s7 }
  0x24   : > { %p1126_p2 = pneg %p1125_p1  ;;  %p1132_p11 = por %p1131_p12, %p1130_p4 }
  0x26   : > { %p1133_p6 = pnand %p1132_p11, %p1126_p2 }
  0x28   : > { %1136 = shalt.err (!%p1133_p6)
}
  0x29   : > { %1024 = dma.hbm_to_vmem [thread:$0]  (!%p1316_p13), %s1312_s12, 128, %s1320_s14, %s188_s16  }
  0x2a   : > { %p1743_p9 = scmp.lt.s32.totalorder %s1201_s21, 3  ;;  %p1744_p7 = scmp.ge.s32.totalorder %s1201_s21, 1 }
  0x2c   : > { %p205_p0 = pnand %p1744_p7, %p1743_p9 }
  0x2d   : > { %s1347_s13 = sand.u32 (!%p205_p0), 1, %s1193_s19   ;;  %p1745_p6 = scmp.ne.s32.totalorder (!%p205_p0), %s1739_s29, 0 }
  0x2e   : > { %208 = sbr.rel (%p205_p0) target bundleno = 1219 (0x4c3), region = 40  ;;  %s1002_s17 = sshll.u32 (!%p205_p0), %s1347_s13, 3 }
  0x2f   : > { %s211_s23 = scalar_lea.sflag (!%p205_p0), [#allocation5], %s1347_s13  ;;  %s214_s15 = scalar_lea.vmem (!%p205_p0), [#allocation4], %s1002_s17 }
  0x33   : > { %v255_v0 = vlaneseq }
  0x34   : > { %1180 = dma.done.wait (%p1745_p6), %s211_s23, 128  }
  0x35   : > { %1182 = vsyncadd (%p1745_p6), %s211_s23, 4294967168  ;;  %v1204_v1 = vmov 0.0   ;;  %v256_v2 = vand.u32 127, %v255_v0  ;;  %v1364_v7 = vld [vmem:[%s214_s15] sm:$0xff]  ;;  %s1205_s29 = smov 17   ;;  %s1206_s12 = smov 1  }
  0x36   : > { %242 = vst [vmem:[#allocation2] sm:$0xff] %v1204_v1  ;;  %243 = vst [vmem:[#allocation2 + $0x18] sm:$0xff] %v1204_v1  ;;  %610 = vmatprep.mubr.f32.mxu0 %v1204_v1  ;;  %892 = vmatprep.mubr.f32.mxu1 %v1204_v1  ;;  %v1368_v8 = vcombine.high %v1364_v7, %v1364_v7  ;;  %s1207_s14 = smov 15   ;;  %s1208_s16 = smov 127   ;;  %vm347_vm4 = vcmask 138240   ;;  %vm323_vm5 = vcmask 7168  }
  0x37   : > { %246 = vst [vmem:[#allocation3 + $0x18] sm:$0xff] %v1204_v1  ;;  %247 = vst [vmem:[#allocation3 + $0x8] sm:$0xff] %v1204_v1  ;;  %v257_v3 = vadd.s32 128, %v256_v2  ;;  %v258_v4 = vand.u32 15, %v256_v2  ;;  %s1209_s25 = smov 113   ;;  %s1210_s26 = smov 111  }
  0x38   : > { %253 = vst [vmem:[#allocation2] sm:$0xf] %v1364_v7  ;;  %254 = vst [vmem:[#allocation2 + $0x18] sm:$0xf] %v1368_v8  ;;  %s1211_s28 = smov 95   ;;  %s1212_s8 = smov 94  }
  0x39   : > { %v259_v5 = vand.u32 15, %v257_v3  ;;  %vm266_vm0 = vcmp.ne.s32.totalorder %v258_v4, 15  ;;  %vm260_vm1 = vcmp.ne.s32.totalorder %v258_v4, 0  ;;  %s1213_s7 = smov 110   ;;  %s1214_s9 = smov 96   ;;  %vm335_vm6 = vcmask 121856  }
  0x3a   : > { %v1006_v6 = vsel %vm266_vm0, 1.0, %v1204_v1  ;;  %v1004_v10 = vsel %vm260_vm1, 1.0, %v1204_v1  ;;  %s1215_s10 = smov 112   ;;  %s1216_s11 = smov 126   ;;  %vm308_vm7 = vcmask 1039360   ;;  %vm296_vm8 = vcmask 924672  }
  0x3b   : > { %vm267_vm2 = vcmp.ne.s32.totalorder %v259_v5, 15  ;;  %vm261_vm3 = vcmp.ne.s32.totalorder %v259_v5, 0  ;;  %vm428_vm9 = vcmask 777216   ;;  %v1217_v57 = vmov 0   ;;  %s911_s23 = scalar_lea.sflag [#allocation6], %s1347_s13  ;;  %p1746_p12 = scmp.ne.s32.totalorder %s1740_s30, 0 }
  0x3c   : > { %v1007_v9 = vsel %vm267_vm2, 1.0, %v1204_v1  ;;  %v1005_v11 = vsel %vm261_vm3, 1.0, %v1204_v1  ;;  %1107 = vset.pattern.permute.xlu0 %v1217_v57  ;;  %vm282_vm10 = vcmask 908288   ;;  %vm440_vm11 = vcmask 769024  }
  0x3d   : > { %v1077_v12 = vpack.i.bf16 %v1007_v9, %v1006_v6  ;;  %v1082_v13 = vpack.i.bf16 %v1005_v11, %v1004_v10  ;;  %vm416_vm12 = vcmask 785408   ;;  %vm404_vm13 = vcmask 900096  }
  0x3e   : > { %vm387_vm14 = vcmask 916480   ;;  %vm375_vm15 = vcmask 1031168   ;;  %vm542_vm0 = vcmask 588800  }
  0x3f   : > { %1078 = vrot.lane.b32.xlu0 %v1077_v12, %s1205_s29  ;;  %1088 = vrot.lane.b32.xlu1 %v1077_v12, %s1206_s12  ;;  %v1377_v14 = vld [vmem:[#allocation2] sm:$0xff]  ;;  %v1381_v15 = vld [vmem:[#allocation2 + $0x18] sm:$0xff] }
  0x43   : > { %1083 = vrot.lane.b32.xlu0 %v1082_v13, %s1207_s14  ;;  %1093 = vrot.lane.b32.xlu1 %v1082_v13, %s1208_s16 }
  0x47   : > { %1098 = vrot.lane.b32.xlu0 %v1077_v12, %s1209_s25  ;;  %390 = vrot.lane.b32.xlu1 %v1377_v14, %s1210_s26 }
  0x4b   : > { %426 = vrot.lane.b32.xlu0 %v1204_v1, %s1211_s28  ;;  %424 = vrot.lane.b32.xlu1 %v1381_v15, %s1211_s28 }
  0x4f   : > { %422 = vrot.lane.b32.xlu0 %v1377_v14, %s1211_s28  ;;  %1103 = vrot.lane.b32.xlu1 %v1082_v13, %s1210_s26 }
  0x53   : > { %392 = vrot.lane.b32.xlu0 %v1381_v15, %s1210_s26 }
  0xb1   : > { %v1079_v16 = vpop.permute.xlu0 %1078  ;;  %v1089_v17 = vpop.permute.xlu1 %1088 }
  0xb2   : > { %v1392_v18 = vunpack.i.l.bf16 %v1079_v16  ;;  %v1394_v19 = vunpack.i.l.bf16 %v1089_v17  ;;  %v1081_v30 = vunpack.i.h.bf16 %v1079_v16  ;;  %v1091_v31 = vunpack.i.h.bf16 %v1089_v17 }
  0xb4   : > { %v352_v20 = vmul.f32 %v1392_v18, %v1377_v14  ;;  %v328_v21 = vmul.f32 %v1394_v19, %v1377_v14  ;;  %v1417_v35 = vmul.f32 0.0, %v1081_v30  ;;  %v1419_v36 = vmul.f32 0.0, %v1091_v31 }
  0xb5   : > { %v1084_v22 = vpop.permute.xlu0 %1083  ;;  %v1094_v23 = vpop.permute.xlu1 %1093  ;;  %v1433_v40 = vsel %vm347_vm4, %v1392_v18, %v1081_v30  ;;  %v1443_v43 = vsel %vm323_vm5, %v1394_v19, %v1091_v31 }
  0xb6   : > { %v1400_v24 = vunpack.i.l.bf16 %v1084_v22  ;;  %434 = vrot.lane.b32.xlu1 %v352_v20, %s1212_s8  ;;  %v1095_v25 = vunpack.i.l.bf16 %v1094_v23  ;;  %398 = vrot.lane.b32.xlu0 %v328_v21, %s1213_s7  ;;  %v1086_v33 = vunpack.i.h.bf16 %v1084_v22  ;;  %v1415_v34 = vunpack.i.h.bf16 %v1094_v23 }
  0xb7   : > { %v353_v42 = vmul.f32 %v1433_v40, %v1381_v15  ;;  %v329_v45 = vmul.f32 %v1443_v43, %v1381_v15 }
  0xb8   : > { %v340_v26 = vmul.f32 %v1400_v24, %v1377_v14  ;;  %v1407_v29 = vmul.f32 0.0, %v1095_v25  ;;  %v1427_v38 = vmul.f32 0.0, %v1086_v33  ;;  %v315_v39 = vmul.f32 %v1415_v34, %v1381_v15 }
  0xb9   : > { %v1099_v27 = vpop.permute.xlu0 %1098  ;;  %v1446_v44 = vsel %vm335_vm6, %v1400_v24, %v1086_v33  ;;  %v1456_v47 = vsel %vm308_vm7, %v1095_v25, %v1415_v34  ;;  %v391_v52 = vpop.permute.xlu1 %390 }
  0xba   : > { %v1100_v28 = vunpack.i.l.bf16 %v1099_v27  ;;  %410 = vrot.lane.b32.xlu1 %v340_v26, %s1214_s9  ;;  %v1421_v37 = vunpack.i.h.bf16 %v1099_v27  ;;  %v341_v46 = vmul.f32 %v1446_v44, %v1381_v15  ;;  %v314_v48 = vmul.f32 %v1377_v14, %v1456_v47 }
  0xbc   : > { %v1409_v32 = vmul.f32 0.0, %v1100_v28  ;;  %v303_v41 = vmul.f32 %v1421_v37, %v1381_v15  ;;  %v1463_v49 = vsel %vm296_vm8, %v1100_v28, %v1421_v37 }
  0xbd   : > { %v427_v50 = vpop.permute.xlu0 %426  ;;  %v302_v51 = vmul.f32 %v1377_v14, %v1463_v49  ;;  %v425_v55 = vpop.permute.xlu1 %424 }
  0xbe   : > { %381 = vrot.lane.b32.xlu1 %v1407_v29, %s1215_s10  ;;  %369 = vrot.lane.b32.xlu0 %v1409_v32, %s1216_s11  ;;  %v430_v17 = vsel %vm428_vm9, %v425_v55, %v427_v50  ;;  %v443_v50 = vld [vmem:[%s1732_s2] sm:$0xf] }
  0xc1   : > { %v423_v53 = vpop.permute.xlu0 %422  ;;  %v1480_v58 = vpop.permute.xlu1 %1103 }
  0xc2   : > { %438 = vrot.lane.b32.xlu1 %v1417_v35, %s1212_s8  ;;  %402 = vrot.lane.b32.xlu0 %v1419_v36, %s1213_s7  ;;  %v429_v56 = vsel %vm428_vm9, %v423_v53, %v425_v55  ;;  %v1505_v28 = vunpack.i.h.bf16 %v1480_v58  ;;  %v1105_v30 = vunpack.i.l.bf16 %v1480_v58 }
  0xc5   : > { %v393_v54 = vpop.permute.xlu0 %392 }
  0xc6   : > { %414 = vrot.lane.b32.xlu1 %v1427_v38, %s1214_s9  ;;  %385 = vrot.lane.b32.xlu0 %v315_v39, %s1215_s10  ;;  %v394_v20 = vsel %vm282_vm10, %v391_v52, %v393_v54 }
  0xca   : > { %373 = vrot.lane.b32.xlu1 %v303_v41, %s1216_s11  ;;  %436 = vrot.lane.b32.xlu0 %v353_v42, %s1212_s8  ;;  %v1515_v42 = vsel %vm282_vm10, %v1105_v30, %v1505_v28 }
  0xce   : > { %400 = vrot.lane.b32.xlu1 %v329_v45, %s1213_s7  ;;  %412 = vrot.lane.b32.xlu0 %v341_v46, %s1214_s9  ;;  %v288_v46 = vmul.f32 %v1377_v14, %v1515_v42 }
  0xd2   : > { %383 = vrot.lane.b32.xlu1 %v314_v48, %s1215_s10  ;;  %360 = vrot.lane.b32.xlu0 %v1377_v14, %s1208_s16  ;;  %v289_v48 = vmul.f32 %v1505_v28, %v1381_v15  ;;  %v1535_v14 = vmul.f32 0.0, %v1105_v30 }
  0xd6   : > { %362 = vrot.lane.b32.xlu1 %v1381_v15, %s1208_s16  ;;  %371 = vrot.lane.b32.xlu0 %v302_v51, %s1216_s11 }
  0xda   : > { %358 = vrot.lane.b32.xlu0 %v1204_v1, %s1208_s16  ;;  %476 = vrot.lane.b32.xlu1 %v391_v52, %s1205_s29 }
  0xde   : > { %494 = vrot.lane.b32.xlu0 %v423_v53, %s1205_s29 }
  0xe2   : > { %480 = vrot.lane.b32.xlu0 %v393_v54, %s1205_s29 }
  0xe6   : > { %496 = vrot.lane.b32.xlu0 %v429_v56, %s1205_s29 }
 0x128   : > { %v435_v59 = vpop.permute.xlu1 %434  ;;  %v399_v60 = vpop.permute.xlu0 %398 }
 0x12c   : > { %v411_v61 = vpop.permute.xlu1 %410 }
 0x130   : > { %v382_v62 = vpop.permute.xlu1 %381  ;;  %v370_v63 = vpop.permute.xlu0 %369 }
 0x134   : > { %v439_v0 = vpop.permute.xlu1 %438  ;;  %v403_v2 = vpop.permute.xlu0 %402 }
 0x138   : > { %v415_v3 = vpop.permute.xlu1 %414  ;;  %v386_v4 = vpop.permute.xlu0 %385 }
 0x13c   : > { %v374_v5 = vpop.permute.xlu1 %373  ;;  %v437_v6 = vpop.permute.xlu0 %436 }
 0x13d   : > { %v442_v21 = vsel %vm440_vm11, %v437_v6, %v439_v0  ;;  %v441_v25 = vsel %vm440_vm11, %v435_v59, %v437_v6 }
 0x140   : > { %v401_v9 = vpop.permute.xlu1 %400  ;;  %v413_v10 = vpop.permute.xlu0 %412 }
 0x141   : > { %v418_v22 = vsel %vm416_vm12, %v413_v10, %v415_v3  ;;  %v405_v23 = vsel %vm404_vm13, %v399_v60, %v401_v9  ;;  %v417_v31 = vsel %vm416_vm12, %v411_v61, %v413_v10  ;;  %v406_v41 = vsel %vm404_vm13, %v401_v9, %v403_v2 }
 0x144   : > { %v384_v11 = vpop.permute.xlu1 %383  ;;  %v361_v12 = vpop.permute.xlu0 %360 }
 0x145   : > { %v389_v26 = vsel %vm387_vm14, %v384_v11, %v386_v4  ;;  %v388_v33 = vsel %vm387_vm14, %v382_v62, %v384_v11 }
 0x148   : > { %v363_v13 = vpop.permute.xlu1 %362  ;;  %v372_v27 = vpop.permute.xlu0 %371 }
 0x149   : > { %462 = vrot.lane.b32.xlu1 %v363_v13, %s1205_s29  ;;  %v365_v16 = vsel %vm308_vm7, %v361_v12, %v363_v13  ;;  %v377_v51 = vsel %vm375_vm15, %v372_v27, %v374_v5  ;;  %v376_v52 = vsel %vm375_vm15, %v370_v63, %v372_v27 }
 0x14a   : > { %460 = vrot.lane.b32.xlu0 %v365_v16, %s1205_s29 }
 0x14c   : > { %v359_v39 = vpop.permute.xlu0 %358 }
 0x14d   : > { %498 = vrot.lane.b32.xlu1 %v430_v17, %s1205_s29  ;;  %v364_v45 = vsel %vm308_vm7, %v359_v39, %v361_v12 }
 0x14e   : > { %482 = vrot.lane.b32.xlu0 %v399_v60, %s1205_s29 }
 0x150   : > { %v495_v15 = vpop.permute.xlu0 %494 }
 0x151   : > { %478 = vrot.lane.b32.xlu1 %v394_v20, %s1205_s29 }
 0x152   : > { %468 = vrot.lane.b32.xlu0 %v374_v5, %s1205_s29 }
 0x154   : > { %v481_v53 = vpop.permute.xlu0 %480 }
 0x155   : > { %500 = vrot.lane.b32.xlu1 %v435_v59, %s1205_s29 }
 0x156   : > { %504 = vrot.lane.b32.xlu0 %v442_v21, %s1205_s29 }
 0x158   : > { %v497_v54 = vpop.permute.xlu0 %496 }
 0x159   : > { %488 = vrot.lane.b32.xlu1 %v411_v61, %s1205_s29  ;;  %v520_v9 = vsel %vm347_vm4, %v495_v15, %v497_v54 }
 0x15a   : > { %492 = vrot.lane.b32.xlu0 %v418_v22, %s1205_s29 }
 0x15d   : > { %474 = vrot.lane.b32.xlu1 %v386_v4, %s1205_s29 }
 0x15e   : > { %484 = vrot.lane.b32.xlu0 %v405_v23, %s1205_s29 }
 0x161   : > { %502 = vrot.lane.b32.xlu1 %v441_v25, %s1205_s29 }
 0x162   : > { %472 = vrot.lane.b32.xlu0 %v389_v26, %s1205_s29 }
 0x165   : > { %490 = vrot.lane.b32.xlu1 %v417_v31, %s1205_s29 }
 0x166   : > { %470 = vrot.lane.b32.xlu0 %v388_v33, %s1205_s29 }
 0x169   : > { %486 = vrot.lane.b32.xlu1 %v406_v41, %s1205_s29 }
 0x16a   : > { %458 = vrot.lane.b32.xlu0 %v364_v45, %s1205_s29 }
 0x16d   : > { %454 = vrot.lane.b32.xlu1 %v288_v46, %s1205_s29 }
 0x16e   : > { %456 = vrot.lane.b32.xlu0 %v289_v48, %s1205_s29 }
 0x171   : > { %466 = vrot.lane.b32.xlu1 %v377_v51, %s1205_s29 }
 0x172   : > { %446 = vperm.xlu0 %1107, %v443_v50   ;;  %v272_v50 = vld [vmem:[%s1731_s1] sm:$0xf] }
 0x175   : > { %464 = vrot.lane.b32.xlu1 %v376_v52, %s1205_s29 }
 0x176   : > { %722 = vrot.lane.b32.xlu0 %v1417_v35, %s1212_s8  ;;  %v477_v35 = vpop.permute.xlu1 %476 }
 0x179   : > { %452 = vrot.lane.b32.xlu1 %v1535_v14, %s1205_s29 }
 0x17a   : > { %700 = vrot.lane.b32.xlu0 %v1427_v38, %s1214_s9 }
 0x17d   : > { %711 = vrot.lane.b32.xlu1 %v1204_v1, %s1211_s28 }
 0x17e   : > { %669 = vrot.lane.b32.xlu0 %v1407_v29, %s1215_s10 }
 0x181   : > { %689 = vrot.lane.b32.xlu1 %v1419_v36, %s1213_s7 }
 0x1bb   : > { %v463_v55 = vpop.permute.xlu1 %462 }
 0x1bc   : > { %v461_v56 = vpop.permute.xlu0 %460 }
 0x1bd   : > { %v509_v41 = vsel %vm347_vm4, %v461_v56, %v463_v55 }
 0x1bf   : > { %v499_v57 = vpop.permute.xlu1 %498 }
 0x1c0   : > { %v483_v58 = vpop.permute.xlu0 %482  ;;  %v521_v5 = vsel %vm347_vm4, %v497_v54, %v499_v57 }
 0x1c3   : > { %v479_v59 = vpop.permute.xlu1 %478 }
 0x1c4   : > { %v469_v60 = vpop.permute.xlu0 %468  ;;  %v515_v20 = vsel %vm347_vm4, %v479_v59, %v481_v53  ;;  %v514_v22 = vsel %vm347_vm4, %v477_v35, %v479_v59 }
 0x1c7   : > { %v501_v38 = vpop.permute.xlu1 %500 }
 0x1c8   : > { %v505_v61 = vpop.permute.xlu0 %504 }
 0x1cb   : > { %v489_v62 = vpop.permute.xlu1 %488 }
 0x1cc   : > { %v493_v63 = vpop.permute.xlu0 %492 }
 0x1cf   : > { %v475_v0 = vpop.permute.xlu1 %474 }
 0x1d0   : > { %v485_v2 = vpop.permute.xlu0 %484 }
 0x1d1   : > { %v516_v17 = vsel %vm347_vm4, %v483_v58, %v485_v2 }
 0x1d3   : > { %v503_v29 = vpop.permute.xlu1 %502 }
 0x1d4   : > { %v523_v3 = vsel %vm347_vm4, %v503_v29, %v505_v61  ;;  %v522_v36 = vsel %vm347_vm4, %v501_v38, %v503_v29  ;;  %v473_v4 = vpop.permute.xlu0 %472 }
 0x1d5   : > { %560 = vmatprep.subr.mxu0 %v523_v3  ;;  %v513_v23 = vsel %vm347_vm4, %v473_v4, %v475_v0 }
 0x1d6   : > { %561 = vmatpush1.msra.mxu0 %v522_v36 }
 0x1d7   : > { %v491_v6 = vpop.permute.xlu1 %490  ;;  %562 = vmatprep.subr.mxu0 %v521_v5 }
 0x1d8   : > { %563 = vmatpush1.msra.mxu0 %v520_v9  ;;  %v519_v10 = vsel %vm347_vm4, %v491_v6, %v493_v63  ;;  %v518_v11 = vsel %vm347_vm4, %v489_v62, %v491_v6  ;;  %v471_v13 = vpop.permute.xlu0 %470 }
 0x1d9   : > { %564 = vmatprep.subr.mxu0 %v519_v10  ;;  %v512_v25 = vsel %vm347_vm4, %v471_v13, %v473_v4 }
 0x1da   : > { %565 = vmatpush1.msra.mxu0 %v518_v11 }
 0x1db   : > { %v487_v12 = vpop.permute.xlu1 %486 }
 0x1dc   : > { %v517_v16 = vsel %vm347_vm4, %v485_v2, %v487_v12  ;;  %v459_v26 = vpop.permute.xlu0 %458 }
 0x1dd   : > { %566 = vmatprep.subr.mxu0 %v517_v16  ;;  %v508_v45 = vsel %vm347_vm4, %v459_v26, %v461_v56 }
 0x1de   : > { %567 = vmatpush1.msra.mxu0 %v516_v17 }
 0x1df   : > { %v455_v21 = vpop.permute.xlu1 %454  ;;  %568 = vmatprep.subr.mxu0 %v515_v20 }
 0x1e0   : > { %569 = vmatpush1.msra.mxu0 %v514_v22  ;;  %v457_v33 = vpop.permute.xlu0 %456 }
 0x1e1   : > { %570 = vmatprep.subr.mxu0 %v513_v23  ;;  %v507_v48 = vsel %vm347_vm4, %v455_v21, %v457_v33 }
 0x1e2   : > { %571 = vmatpush1.msra.mxu0 %v512_v25 }
 0x1e3   : > { %v467_v27 = vpop.permute.xlu1 %466 }
 0x1e4   : > { %v511_v30 = vsel %vm347_vm4, %v467_v27, %v469_v60 }
 0x1e5   : > { %572 = vmatprep.subr.mxu0 %v511_v30 }
 0x1e7   : > { %v465_v31 = vpop.permute.xlu1 %464 }
 0x1e8   : > { %v510_v39 = vsel %vm347_vm4, %v465_v31, %v467_v27 }
 0x1e9   : > { %573 = vmatpush1.msra.mxu0 %v510_v39 }
 0x1ea   : > { %574 = vmatprep.subr.mxu0 %v509_v41 }
 0x1eb   : > { %575 = vmatpush1.msra.mxu0 %v508_v45  ;;  %v453_v46 = vpop.permute.xlu1 %452 }
 0x1ec   : > { %576 = vmatprep.subr.mxu0 %v507_v48  ;;  %v506_v51 = vsel %vm347_vm4, %v453_v46, %v455_v21  ;;  %v726_v46 = vld [vmem:[%s1734_s4] sm:$0xf] }
 0x1ed   : > { %577 = vmatpush1.msra.mxu0 %v506_v51  ;;  %v447_v52 = vpop.permute.xlu0 %446 }
 0x1ee   : > { %1008 = vmatmul.mubr.msk.f32.vlgmr.msra.gmra.mxu0 %vm542_vm0, %v272_v50 }
 0x2ae   : > { %v612_v15 = vpop.f32.mrf.mxu0 }
 0x2af   : > { %v613_v53 = vadd.f32 %v612_v15, %v447_v52 }
 0x2b0   : > { %v614_v35 = vpop.f32.mrf.mxu0 }
 0x2b1   : > { %617 = vst [vmem:[#allocation3 + $0x18] sm:$0xf] %v613_v53  ;;  %v615_v54 = vadd.f32 %v614_v35, %v447_v52 }
 0x2b3   : > { %618 = vst [vmem:[#allocation3 + $0x8] sm:$0xf] %v615_v54 }
 0x2b8   : > { %v1569_v55 = vld [vmem:[#allocation3 + $0x18] sm:$0xff] }
 0x2b9   : > { %707 = vrot.lane.b32.xlu1 %v1569_v55, %s1211_s28  ;;  %677 = vrot.lane.b32.xlu0 %v1569_v55, %s1210_s26  ;;  %v641_v56 = vmul.f32 %v1392_v18, %v1569_v55  ;;  %v635_v58 = vmul.f32 %v1394_v19, %v1569_v55  ;;  %v638_v59 = vmul.f32 %v1400_v24, %v1569_v55 }
 0x2ba   : > { %v1577_v57 = vld [vmem:[#allocation3 + $0x8] sm:$0xff]  ;;  %v630_v18 = vmul.f32 %v1569_v55, %v1456_v47  ;;  %v627_v19 = vmul.f32 %v1569_v55, %v1463_v49  ;;  %v624_v50 = vmul.f32 %v1569_v55, %v1515_v42 }
 0x2bb   : > { %v636_v60 = vmul.f32 %v1577_v57, %v1443_v43  ;;  %v642_v24 = vmul.f32 %v1577_v57, %v1433_v40  ;;  %v628_v47 = vmul.f32 %v1421_v37, %v1577_v57  ;;  %v639_v43 = vmul.f32 %v1577_v57, %v1446_v44  ;;  %v723_v37 = vpop.permute.xlu0 %722  ;;  %v712_v44 = vpop.permute.xlu1 %711 }
 0x2bc   : > { %v631_v40 = vmul.f32 %v1415_v34, %v1577_v57  ;;  %v625_v45 = vmul.f32 %v1505_v28, %v1577_v57 }
 0x2bd   : > { %718 = vrot.lane.b32.xlu1 %v641_v56, %s1212_s8  ;;  %709 = vrot.lane.b32.xlu0 %v1577_v57, %s1211_s28  ;;  %s1016_s28 = sshll.u32 %s1270_s22, 7  ;;  %s1218_s22 = smov [#allocation7]  }
 0x2bf   : > { %v701_v49 = vpop.permute.xlu0 %700  ;;  %v690_v38 = vpop.permute.xlu1 %689 }
 0x2c1   : > { %685 = vrot.lane.b32.xlu1 %v635_v58, %s1213_s7  ;;  %696 = vrot.lane.b32.xlu0 %v638_v59, %s1214_s9 }
 0x2c3   : > { %v670_v61 = vpop.permute.xlu0 %669 }
 0x2c5   : > { %679 = vrot.lane.b32.xlu1 %v1577_v57, %s1210_s26  ;;  %671 = vrot.lane.b32.xlu0 %v630_v18, %s1215_s10 }
 0x2c9   : > { %687 = vrot.lane.b32.xlu0 %v636_v60, %s1213_s7  ;;  %660 = vrot.lane.b32.xlu1 %v627_v19, %s1216_s11 }
 0x2cd   : > { %649 = vrot.lane.b32.xlu0 %v1569_v55, %s1208_s16  ;;  %720 = vrot.lane.b32.xlu1 %v642_v24, %s1212_s8  ;;  %s240_s8 = scalar_lea.vmem [#allocation7], %s1002_s17  ;;  %s1141_s17 = sshll.u32 %s1218_s22, 4  ;;  %s1142_s17 = int_to_ptr.vmem [resolvable:$false] %s1141_s17 }
 0x2ce   : > { %s925_s7 = sshll.u32 %s240_s8, 4  ;;  %s1143_s12 = scalar_lea.vmem %s1142_s17, 256  ;;  %s926_s7 = int_to_ptr.vmem [resolvable:$true] %s925_s7 }
 0x2cf   : > { %s1137_s15 = scalar_lea.vmem %s926_s7, 128  ;;  %p1144_p3 = scmp.lt.s32.totalorder %s926_s7, %s1142_s17 }
 0x2d0   : > { %p1138_p11 = scmp.ne.s32.totalorder %s926_s7, %s1137_s15  ;;  %p1145_p5 = scmp.lt.s32.totalorder %s1143_s12, %s1137_s15 }
 0x2d1   : > { %662 = vrot.lane.b32.xlu0 %v628_v47, %s1216_s11  ;;  %698 = vrot.lane.b32.xlu1 %v639_v43, %s1214_s9 }
 0x2d2   : > { %p1139_p13 = pnand %p1138_p11, %p1746_p12  ;;  %p1146_p8 = por %p1145_p5, %p1144_p3 }
 0x2d4   : > { %p1140_p1 = pneg %p1139_p13 }
 0x2d5   : > { %647 = vrot.lane.b32.xlu0 %v1204_v1, %s1208_s16  ;;  %658 = vrot.lane.b32.xlu1 %v1409_v32, %s1216_s11  ;;  %s923_s11 = scalar_lea.hbm %s1735_s5, %s1016_s28 }
 0x2d6   : > { %p1147_p10 = pnand %p1146_p8, %p1140_p1 }
 0x2d9   : > { %673 = vrot.lane.b32.xlu1 %v631_v40, %s1215_s10 }
 0x2dd   : > { %651 = vrot.lane.b32.xlu1 %v1577_v57, %s1208_s16 }
 0x32b   : > { %v678_v62 = vpop.permute.xlu0 %677  ;;  %v708_v63 = vpop.permute.xlu1 %707 }
 0x32c   : > { %759 = vrot.lane.b32.xlu1 %v678_v62, %s1205_s29  ;;  %777 = vrot.lane.b32.xlu0 %v708_v63, %s1205_s29 }
 0x32f   : > { %v710_v1 = vpop.permute.xlu0 %709  ;;  %v719_v32 = vpop.permute.xlu1 %718 }
 0x330   : > { %783 = vrot.lane.b32.xlu1 %v719_v32, %s1205_s29  ;;  %v713_v3 = vsel %vm428_vm9, %v708_v63, %v710_v1  ;;  %v714_v17 = vsel %vm428_vm9, %v710_v1, %v712_v44 }
 0x333   : > { %v697_v34 = vpop.permute.xlu0 %696  ;;  %v686_v0 = vpop.permute.xlu1 %685 }
 0x334   : > { %771 = vrot.lane.b32.xlu1 %v697_v34, %s1205_s29  ;;  %765 = vrot.lane.b32.xlu0 %v686_v0, %s1205_s29 }
 0x337   : > { %v680_v2 = vpop.permute.xlu1 %679  ;;  %v672_v36 = vpop.permute.xlu0 %671 }
 0x338   : > { %763 = vrot.lane.b32.xlu0 %v680_v2, %s1205_s29  ;;  %v675_v5 = vsel %vm387_vm14, %v670_v61, %v672_v36  ;;  %v681_v21 = vsel %vm282_vm10, %v678_v62, %v680_v2 }
 0x33b   : > { %v661_v29 = vpop.permute.xlu1 %660  ;;  %v688_v10 = vpop.permute.xlu0 %687 }
 0x33c   : > { %779 = vrot.lane.b32.xlu0 %v713_v3, %s1205_s29  ;;  %v691_v26 = vsel %vm404_vm13, %v686_v0, %v688_v10  ;;  %v692_v41 = vsel %vm404_vm13, %v688_v10, %v690_v38 }
 0x33f   : > { %v721_v4 = vpop.permute.xlu1 %720  ;;  %v650_v12 = vpop.permute.xlu0 %649 }
 0x340   : > { %753 = vrot.lane.b32.xlu0 %v675_v5, %s1205_s29  ;;  %v725_v22 = vsel %vm440_vm11, %v721_v4, %v723_v37  ;;  %v724_v27 = vsel %vm440_vm11, %v719_v32, %v721_v4 }
 0x343   : > { %v699_v6 = vpop.permute.xlu1 %698  ;;  %v663_v20 = vpop.permute.xlu0 %662 }
 0x344   : > { %v703_v25 = vsel %vm416_vm12, %v699_v6, %v701_v49  ;;  %v702_v33 = vsel %vm416_vm12, %v697_v34, %v699_v6  ;;  %v665_v48 = vsel %vm375_vm15, %v661_v29, %v663_v20 }
 0x347   : > { %v659_v9 = vpop.permute.xlu1 %658  ;;  %v648_v31 = vpop.permute.xlu0 %647 }
 0x348   : > { %v664_v23 = vsel %vm375_vm15, %v659_v9, %v661_v29  ;;  %v653_v39 = vsel %vm308_vm7, %v648_v31, %v650_v12 }
 0x34b   : > { %v674_v11 = vpop.permute.xlu1 %673 }
 0x34c   : > { %v676_v30 = vsel %vm387_vm14, %v672_v36, %v674_v11 }
 0x34f   : > { %v652_v13 = vpop.permute.xlu1 %651 }
 0x350   : > { %745 = vrot.lane.b32.xlu1 %v652_v13, %s1205_s29  ;;  %v654_v16 = vsel %vm308_vm7, %v650_v12, %v652_v13 }
 0x351   : > { %743 = vrot.lane.b32.xlu0 %v654_v16, %s1205_s29  ;;  %v619_v16 = vld [vmem:[%s1733_s3] sm:$0xf] }
 0x354   : > { %781 = vrot.lane.b32.xlu1 %v714_v17, %s1205_s29 }
 0x355   : > { %751 = vrot.lane.b32.xlu0 %v663_v20, %s1205_s29 }
 0x358   : > { %761 = vrot.lane.b32.xlu1 %v681_v21, %s1205_s29 }
 0x359   : > { %787 = vrot.lane.b32.xlu0 %v725_v22, %s1205_s29 }
 0x35c   : > { %747 = vrot.lane.b32.xlu1 %v664_v23, %s1205_s29 }
 0x35d   : > { %775 = vrot.lane.b32.xlu0 %v703_v25, %s1205_s29 }
 0x360   : > { %757 = vrot.lane.b32.xlu1 %v674_v11, %s1205_s29 }
 0x361   : > { %767 = vrot.lane.b32.xlu0 %v691_v26, %s1205_s29 }
 0x364   : > { %785 = vrot.lane.b32.xlu1 %v724_v27, %s1205_s29 }
 0x365   : > { %755 = vrot.lane.b32.xlu0 %v676_v30, %s1205_s29 }
 0x368   : > { %773 = vrot.lane.b32.xlu1 %v702_v33, %s1205_s29 }
 0x369   : > { %741 = vrot.lane.b32.xlu0 %v653_v39, %s1205_s29 }
 0x36c   : > { %769 = vrot.lane.b32.xlu1 %v692_v41, %s1205_s29 }
 0x36d   : > { %739 = vrot.lane.b32.xlu0 %v625_v45, %s1205_s29 }
 0x370   : > { %749 = vrot.lane.b32.xlu1 %v665_v48, %s1205_s29 }
 0x371   : > { %729 = vperm.xlu0 %1107, %v726_v46  }
 0x374   : > { %737 = vrot.lane.b32.xlu1 %v624_v50, %s1205_s29 }
 0x378   : > { %735 = vrot.lane.b32.xlu1 %v1535_v14, %s1205_s29 }
 0x39e   : > { %v778_v28 = vpop.permute.xlu0 %777  ;;  %v760_v52 = vpop.permute.xlu1 %759 }
 0x3a2   : > { %v784_v53 = vpop.permute.xlu1 %783 }
 0x3a6   : > { %v766_v51 = vpop.permute.xlu0 %765  ;;  %v772_v54 = vpop.permute.xlu1 %771 }
 0x3aa   : > { %v764_v15 = vpop.permute.xlu0 %763 }
 0x3ae   : > { %v780_v35 = vpop.permute.xlu0 %779 }
 0x3af   : > { %v803_v49 = vsel %vm347_vm4, %v778_v28, %v780_v35 }
 0x3b2   : > { %v754_v56 = vpop.permute.xlu0 %753 }
 0x3c2   : > { %v746_v57 = vpop.permute.xlu1 %745 }
 0x3c3   : > { %v744_v58 = vpop.permute.xlu0 %743 }
 0x3c4   : > { %v792_v9 = vsel %vm347_vm4, %v744_v58, %v746_v57 }
 0x3c6   : > { %v782_v59 = vpop.permute.xlu1 %781 }
 0x3c7   : > { %v752_v18 = vpop.permute.xlu0 %751  ;;  %v804_v37 = vsel %vm347_vm4, %v780_v35, %v782_v59 }
 0x3ca   : > { %v762_v60 = vpop.permute.xlu1 %761 }
 0x3cb   : > { %v788_v19 = vpop.permute.xlu0 %787  ;;  %v798_v34 = vsel %vm347_vm4, %v762_v60, %v764_v15  ;;  %v797_v29 = vsel %vm347_vm4, %v760_v52, %v762_v60 }
 0x3ce   : > { %v748_v42 = vpop.permute.xlu1 %747 }
 0x3cf   : > { %v776_v55 = vpop.permute.xlu0 %775 }
 0x3d2   : > { %v758_v24 = vpop.permute.xlu1 %757 }
 0x3d3   : > { %v768_v47 = vpop.permute.xlu0 %767 }
 0x3d4   : > { %v799_v32 = vsel %vm347_vm4, %v766_v51, %v768_v47 }
 0x3d6   : > { %v786_v43 = vpop.permute.xlu1 %785 }
 0x3d7   : > { %v806_v14 = vsel %vm347_vm4, %v786_v43, %v788_v19  ;;  %v805_v40 = vsel %vm347_vm4, %v784_v53, %v786_v43  ;;  %v756_v62 = vpop.permute.xlu0 %755 }
 0x3d8   : > { %842 = vmatprep.subr.mxu1 %v806_v14  ;;  %v796_v3 = vsel %vm347_vm4, %v756_v62, %v758_v24  ;;  %v795_v36 = vsel %vm347_vm4, %v754_v56, %v756_v62 }
 0x3d9   : > { %843 = vmatpush1.msra.mxu1 %v805_v40 }
 0x3da   : > { %844 = vmatprep.subr.mxu1 %v804_v37  ;;  %v774_v44 = vpop.permute.xlu1 %773 }
 0x3db   : > { %845 = vmatpush1.msra.mxu1 %v803_v49  ;;  %v802_v38 = vsel %vm347_vm4, %v774_v44, %v776_v55  ;;  %v801_v61 = vsel %vm347_vm4, %v772_v54, %v774_v44  ;;  %v742_v0 = vpop.permute.xlu0 %741 }
 0x3dc   : > { %846 = vmatprep.subr.mxu1 %v802_v38  ;;  %v791_v11 = vsel %vm347_vm4, %v742_v0, %v744_v58 }
 0x3dd   : > { %847 = vmatpush1.msra.mxu1 %v801_v61 }
 0x3de   : > { %v770_v63 = vpop.permute.xlu1 %769 }
 0x3df   : > { %v800_v1 = vsel %vm347_vm4, %v768_v47, %v770_v63  ;;  %v740_v10 = vpop.permute.xlu0 %739 }
 0x3e0   : > { %848 = vmatprep.subr.mxu1 %v800_v1 }
 0x3e1   : > { %849 = vmatpush1.msra.mxu1 %v799_v32 }
 0x3e2   : > { %850 = vmatprep.subr.mxu1 %v798_v34  ;;  %v750_v2 = vpop.permute.xlu1 %749 }
 0x3e3   : > { %851 = vmatpush1.msra.mxu1 %v797_v29  ;;  %v794_v4 = vsel %vm347_vm4, %v750_v2, %v752_v18  ;;  %v793_v6 = vsel %vm347_vm4, %v748_v42, %v750_v2 }
 0x3e4   : > { %852 = vmatprep.subr.mxu1 %v796_v3 }
 0x3e5   : > { %853 = vmatpush1.msra.mxu1 %v795_v36 }
 0x3e6   : > { %854 = vmatprep.subr.mxu1 %v794_v4  ;;  %v738_v5 = vpop.permute.xlu1 %737 }
 0x3e7   : > { %855 = vmatpush1.msra.mxu1 %v793_v6  ;;  %v790_v12 = vsel %vm347_vm4, %v738_v5, %v740_v10 }
 0x3e8   : > { %856 = vmatprep.subr.mxu1 %v792_v9 }
 0x3e9   : > { %857 = vmatpush1.msra.mxu1 %v791_v11 }
 0x3ea   : > { %858 = vmatprep.subr.mxu1 %v790_v12  ;;  %v736_v13 = vpop.permute.xlu1 %735 }
 0x3eb   : > { %v789_v17 = vsel %vm347_vm4, %v736_v13, %v738_v5 }
 0x3ec   : > { %859 = vmatpush1.msra.mxu1 %v789_v17  ;;  %v730_v20 = vpop.permute.xlu0 %729 }
 0x3ed   : > { %1009 = vmatmul.mubr.msk.f32.vlgmr.msra.gmra.mxu1 %vm542_vm0, %v619_v16 }
 0x4ad   : > { %v894_v21 = vpop.f32.mrf.mxu1 }
 0x4ae   : > { %v895_v22 = vadd.f32 %v894_v21, %v730_v20 }
 0x4af   : > { %v896_v23 = vpop.f32.mrf.mxu1 }
 0x4b0   : > { %v897_v25 = vadd.f32 %v896_v23, %v730_v20  ;;  %v903_v26 = vadd.f32 %v895_v22, %v1364_v7 }
 0x4b2   : > { %v904_v27 = vadd.f32 %v897_v25, %v1368_v8 }
 0x4b4   : > { %v907_v30 = vcombine.low %v903_v26, %v904_v27 }
 0x4b6   : > { %909 = vst [vmem:[%s240_s8] sm:$0xff] %v907_v30 }
 0x4b7   : > { %1150 = shalt.err (!%p1147_p10)
}
 0x4b8   : > { %s1151_s14 = scalar_lea.hbm %s923_s11, 128  ;;  %s1155_s25 = scalar_lea.hbm %s1735_s5, 256 }
 0x4b9   : > { %p1152_p2 = scmp.ne.s32.totalorder %s923_s11, %s1151_s14  ;;  %p1156_p7 = scmp.lt.s32.totalorder %s923_s11, %s1735_s5 }
 0x4ba   : > { %p1157_p0 = scmp.lt.s32.totalorder %s1155_s25, %s1151_s14 }
 0x4bb   : > { %p1153_p4 = pnand %p1152_p2, %p1746_p12 }
 0x4bc   : > { %p1158_p6 = por %p1157_p0, %p1156_p7 }
 0x4bd   : > { %p1154_p9 = pneg %p1153_p4 }
 0x4bf   : > { %p1159_p11 = pnand %p1158_p6, %p1154_p9 }
 0x4c1   : > { %1162 = shalt.err (!%p1159_p11)
}
 0x4c2   : > { %1019 = dma.vmem_to_hbm [thread:$0]  (%p1746_p12), %s926_s7, 128, %s923_s11, %s911_s23  }
 0x4c3 PF: > { %s937_s28 = sand.u32 1, %s1189_s18   ;;  %p1747_p13 = scmp.ne.s32.totalorder %s1741_s6, 0 }
 0x4c4   : > { %p1748_p1 = scmp.ge.s32.totalorder %s1201_s21, 2  ;;  %s938_s8 = scalar_lea.sflag [#allocation6], %s937_s28 }
 0x4c6   : > { %p1026_p3 = pnand %p1748_p1, %p1747_p13 }
 0x4c8   : > { %p1027_p5 = pneg %p1026_p3 }
 0x4ca   : > { %1184 = dma.done.wait (%p1027_p5), %s938_s8, 128  }
 0x4cb   : > { %1186 = vsyncadd (%p1027_p5), %s938_s8, 4294967168  ;;  %p18_p8 = scmp.ge.s32.totalorder %s1274_s24, 4   ;;  %s1749_s18 = smov %s1193_s19 }
 0x4cc   : > { %s1750_s19 = smov %s1197_s20  ;;  %s1751_s20 = smov %s1286_s27 }
 0x4cd   : > { %s1752_s21 = smov %s1274_s24  ;;  %20 = sbr.rel (!%p18_p8) target bundleno = 5 (0x5), region = 85 }
 0x4d2   :  { %943 = vsyncpa [#allocation5], 1 }
 0x4d3   :  { %945 = vsyncpa [#allocation5 + $0x1], 1 }
 0x4d4   :  { %946 = vsyncpa [#allocation6], 1 }
 0x4d5   :  { %948 = vsyncpa [#allocation6 + $0x1], 1 }

</bundles_post_ra>
